<compile_context>
chip_gen: v7x
topology: tpu7x:2x2x1
jax: 0.10.0
libtpu: 0.0.40
codegen_flags: <defaults>
</compile_context>

<pallas_src>
import functools

import jax
import jax.numpy as jnp
from jax.experimental import pallas as pl
from jax.experimental.pallas import tpu as pltpu


# ------------------------------ Fused Pallas kernel ------------------------------

def _fused_kernel(a_ref, x_ref, p_ref, o_ref, *, layout, inv_n):
    """One grid step == one graph.

    a_ref : (1, n, n)   normalized adjacency diagonal block for this graph
    x_ref : (1, n, F0)  node features for this graph
    p_ref : (R, C)      packed parameters (resident across grid steps)
    o_ref : (1, 1, num_nodes) decoder output row for this graph
    """

    def get(name):
        row, r, c = layout[name]          # static python ints -> zero-cost view
        return p_ref[row:row + r, 0:c]

    a = a_ref[0]                          # (n, n)
    h = x_ref[0]                          # (n, F0)

    # 6 GCN layers; contraction order chosen per layer by min(F_in, F_out).
    for i in range(1, 7):
        w = get(f"w{i}")
        b = get(f"b{i}")
        f_in, f_out = w.shape
        if f_in < f_out:                  # (A @ X) @ W
            h = jnp.dot(jnp.dot(a, h, preferred_element_type=jnp.float32), w,
                        preferred_element_type=jnp.float32) + b
        else:                             # A @ (X @ W)
            h = jnp.dot(a, jnp.dot(h, w, preferred_element_type=jnp.float32),
                        preferred_element_type=jnp.float32) + b
        if i < 6:                         # conv6: no ReLU before pooling
            h = jnp.maximum(h, 0.0)

    # Global pooling over the local (n, F) block — plain reductions, no mask.
    # (Assumes each graph owns a contiguous, equal-sized node block — true for
    #  the batch construction used here; 1/n is a compile-time constant.)
    gmp = jnp.max(h, axis=0, keepdims=True)             # (1, F)
    gap = jnp.sum(h, axis=0, keepdims=True) * inv_n     # (1, F)

    # Encoder on cat([gmp, gap], dim=1) as a split matmul (weights pre-split
    # in the wrapper):  z = gmp @ We_gmp + gap @ We_gap + be
    z = (jnp.dot(gmp, get("we_gmp"), preferred_element_type=jnp.float32)
         + jnp.dot(gap, get("we_gap"), preferred_element_type=jnp.float32)
         + get("be"))

    # Decoder — model4_variant1.forward returns the decoder output directly
    # (self.act / self.output_act are NOT applied after the decoder).
    o_ref[0] = (jnp.dot(z, get("wd"), preferred_element_type=jnp.float32)
                + get("bd"))


def pack_params(params, f_pool):
    """Pack every weight/bias into ONE (R, C) f32 buffer.

    Each param starts on an 8-row (sublane) boundary so the in-kernel static
    slices never straddle a tile boundary.  Returns (buffer, layout) where
    layout[name] = (row_offset, rows, cols)."""
    entries = []
    for i in range(1, 7):
        w, b = params[f"conv{i}"]
        entries.append((f"w{i}", w))
        entries.append((f"b{i}", b.reshape(1, -1)))
    we, be = params["encoder"]
    entries.append(("we_gmp", we[:f_pool]))              # encoder split here,
    entries.append(("we_gap", we[f_pool:]))              # not inside the kernel
    entries.append(("be", be.reshape(1, -1)))
    wd, bd = params["decoder"]
    entries.append(("wd", wd))
    entries.append(("bd", bd.reshape(1, -1)))

    max_cols = max(int(a.shape[1]) for _, a in entries)
    layout, blocks, row = {}, [], 0
    for name, a in entries:
        r, c = int(a.shape[0]), int(a.shape[1])
        r_pad = -(-r // 8) * 8
        blk = jnp.zeros((r_pad, max_cols), jnp.float32).at[:r, :c].set(
            a.astype(jnp.float32))
        blocks.append(blk)
        layout[name] = (row, r, c)
        row += r_pad
    return jnp.concatenate(blocks, axis=0), layout


def fused_forward(packed, a_blk, x_blk, *, layout):
    """Single pallas_call, grid over graphs.

    packed : (R, C)      packed parameters
    a_blk  : (B, n, n)   per-graph normalized adjacency blocks
    x_blk  : (B, n, F0)  per-graph node features
    """
    B, n, _ = a_blk.shape
    f0 = x_blk.shape[2]
    num_out = layout["wd"][2]
    kernel = functools.partial(_fused_kernel, layout=layout, inv_n=1.0 / n)
    out = pl.pallas_call(
        kernel,
        out_shape=jax.ShapeDtypeStruct((B, 1, num_out), jnp.float32),
        grid_spec=pltpu.PrefetchScalarGridSpec(
            num_scalar_prefetch=0,
            grid=(B,),
            in_specs=[
                pl.BlockSpec((1, n, n), lambda g: (g, 0, 0)),
                pl.BlockSpec((1, n, f0), lambda g: (g, 0, 0)),
                # constant block index -> params stay VMEM-resident, one DMA
                pl.BlockSpec(packed.shape, lambda g: (0, 0)),
            ],
            out_specs=pl.BlockSpec((1, 1, num_out), lambda g: (g, 0, 0)),
        ),
        compiler_params=pltpu.CompilerParams(
            dimension_semantics=("parallel",)),   # shards graphs across v7x's 2 TCs
    )(a_blk, x_blk, packed)
    return out.reshape(B, num_out)


# --------------------------------- Glue --------------------------------------

def build_norm_adj(edge_index, n_total):
    """Dense symmetric-normalized adjacency with self loops (PyG GCNConv default).
    Precomputed ONCE per graph topology, outside the per-forward path."""
    src, dst = edge_index[0], edge_index[1]
    a = jnp.zeros((n_total, n_total), jnp.float32)
    a = a.at[dst, src].set(1.0)                       # messages flow src -> dst
    a = a + jnp.eye(n_total, dtype=jnp.float32)       # add self loops
    deg = jnp.sum(a, axis=1)
    d_inv_sqrt = 1.0 / jnp.sqrt(deg)
    return d_inv_sqrt[:, None] * a * d_inv_sqrt[None, :]


def extract_graph_blocks(a_hat, batch_size, num_nodes):
    """Pull the (n, n) diagonal blocks of the block-diagonal normalized adjacency.
    Valid because batched graphs have no cross-graph edges and nodes are
    contiguous per graph."""
    a4 = a_hat.reshape(batch_size, num_nodes, batch_size, num_nodes)
    idx = jnp.arange(batch_size)
    return a4[idx, :, idx, :]                          # (B, n, n)


def init_params(num_nodes, num_features, embedding_sequence, latent_space_dim, seed=42):
    dims = [num_features] + list(embedding_sequence)
    key = jax.random.PRNGKey(seed)
    params = {}
    for i in range(6):
        key, kw = jax.random.split(key)
        fan_in, fan_out = dims[i], dims[i + 1]
        scale = jnp.sqrt(6.0 / (fan_in + fan_out))
        w = jax.random.uniform(kw, (fan_in, fan_out), jnp.float32, -scale, scale)
        params[f"conv{i + 1}"] = (w, jnp.zeros((fan_out,), jnp.float32))
    # TODO(synk): Encoder/Decoder class bodies are not given in the source file;
    # they are modeled as single Linear layers (2*emb[5] -> latent, latent -> num_nodes).
    key, ke, kd = jax.random.split(key, 3)
    enc_in = 2 * embedding_sequence[5]
    params["encoder"] = (
        jax.random.uniform(ke, (enc_in, latent_space_dim), jnp.float32, -0.2, 0.2),
        jnp.zeros((latent_space_dim,), jnp.float32),
    )
    params["decoder"] = (
        jax.random.uniform(kd, (latent_space_dim, num_nodes), jnp.float32, -0.2, 0.2),
        jnp.zeros((num_nodes,), jnp.float32),
    )
    return params


def reference_forward(params, a_hat, x, mask):
    """Pure-JAX reference for correctness check (model4_variant1 semantics)."""
    h = x
    for i in range(1, 7):
        w, b = params[f"conv{i}"]
        h = a_hat @ (h @ w) + b
        if i < 6:
            h = jnp.maximum(h, 0.0)
    m = mask > 0.5
    gmp = jnp.max(jnp.where(m[:, :, None], h[None], -jnp.inf), axis=1)
    gap = jnp.where(m[:, :, None], h[None], 0.0).sum(1) / mask.sum(1, keepdims=True)
    pooled = jnp.concatenate([gmp, gap], axis=1)
    we, be = params["encoder"]
    wd, bd = params["decoder"]
    return (pooled @ we + be) @ wd + bd


if __name__ == "__main__":
    # Small deterministic problem: 2 graphs x 8 nodes, 4 features per node.
    num_nodes = 8                      # nodes per graph (= decoder output width)
    num_features = 4
    embedding_sequence = [16, 16, 16, 16, 16, 8]
    latent_space_dim = 4
    batch_size = 2
    total_nodes = batch_size * num_nodes

    key = jax.random.PRNGKey(0)
    kx, _ = jax.random.split(key)
    x = jax.random.normal(kx, (total_nodes, num_features), jnp.float32)

    # Ring graph inside each sub-graph (bidirectional edges).
    edges = []
    for g in range(batch_size):
        off = g * num_nodes
        for i in range(num_nodes):
            j = (i + 1) % num_nodes
            edges.append((off + i, off + j))
            edges.append((off + j, off + i))
    edge_index = jnp.asarray(edges, dtype=jnp.int32).T          # (2, E)
    batch_index = jnp.repeat(jnp.arange(batch_size, dtype=jnp.int32), num_nodes)

    params = init_params(num_nodes, num_features, embedding_sequence, latent_space_dim)

    # Topology-dependent prep done once, outside the per-forward path.
    a_hat = build_norm_adj(edge_index, total_nodes)
    a_blk = extract_graph_blocks(a_hat, batch_size, num_nodes)   # (B, n, n)
    x_blk = x.reshape(batch_size, num_nodes, num_features)       # (B, n, F0)
    packed, layout = pack_params(params, f_pool=embedding_sequence[5])

    fwd = jax.jit(lambda p, a, xb: fused_forward(p, a, xb, layout=layout))
    out = fwd(packed, a_blk, x_blk)
    out = jax.block_until_ready(out)

    # Pure-JAX reference (uses the full adjacency + mask path).
    mask = (batch_index[None, :] == jnp.arange(batch_size)[:, None]).astype(jnp.float32)
    ref = reference_forward(params, a_hat, x, mask)
    assert out.shape == (batch_size, num_nodes)
    assert jnp.allclose(out, ref, rtol=1e-3, atol=1e-3), "mismatch vs pure-JAX reference"

    print("KERNEL_OK")
</pallas_src>

<mosaic_0001>
module attributes {stable_mosaic.version = 11 : i64} {
  func.func @_fused_kernel(%arg0: i32, %arg1: memref<1x8x8xf32, #tpu.memory_space<vmem>>, %arg2: memref<1x8x4xf32, #tpu.memory_space<vmem>>, %arg3: memref<176x16xf32, #tpu.memory_space<vmem>>, %arg4: memref<1x1x8xf32, #tpu.memory_space<vmem>>) attributes {dimension_semantics = [#tpu.dimension_semantics<parallel>], iteration_bounds = array<i64: 2>, scalar_prefetch = 0 : i64, scratch_operands = 0 : i64, tpu.core_type = #tpu.core_type<tc>, window_params = [{transform_indices = @transform_0, window_bounds = array<i64: 1, 8, 8>}, {transform_indices = @transform_1, window_bounds = array<i64: 1, 8, 4>}, {pipeline_mode = #tpu.pipeline_mode<synchronous>, transform_indices = @transform_2, window_bounds = array<i64: 176, 16>}, {transform_indices = @transform_3, window_bounds = array<i64: 1, 1, 8>}]} {
    %c0 = arith.constant 0 : index
    %c0_0 = arith.constant 0 : index
    %c0_1 = arith.constant 0 : index
    %0 = vector.load %arg1[%c0, %c0_0, %c0_1] : memref<1x8x8xf32, #tpu.memory_space<vmem>>, vector<1x8x8xf32>
    %1 = vector.shape_cast %0 : vector<1x8x8xf32> to vector<8x8xf32>
    %c0_2 = arith.constant 0 : index
    %c0_3 = arith.constant 0 : index
    %c0_4 = arith.constant 0 : index
    %2 = vector.load %arg2[%c0_2, %c0_3, %c0_4] : memref<1x8x4xf32, #tpu.memory_space<vmem>>, vector<1x8x4xf32>
    %3 = vector.shape_cast %2 : vector<1x8x4xf32> to vector<8x4xf32>
    %c0_5 = arith.constant 0 : index
    %c0_6 = arith.constant 0 : index
    %4 = vector.load %arg3[%c0_5, %c0_6] : memref<176x16xf32, #tpu.memory_space<vmem>>, vector<4x16xf32>
    %c8 = arith.constant 8 : index
    %c0_7 = arith.constant 0 : index
    %5 = vector.load %arg3[%c8, %c0_7] : memref<176x16xf32, #tpu.memory_space<vmem>>, vector<1x16xf32>
    %cst = arith.constant dense<0.000000e+00> : vector<8x4xf32>
    %6 = tpu.matmul %1, %3, %cst {dimension_numbers = #tpu.dot_dimension_numbers<[1], [0], [0], [1], [0, 0, 1, 1], [], []>} : vector<8x8xf32>, vector<8x4xf32>, vector<8x4xf32> -> vector<8x4xf32>
    %cst_8 = arith.constant dense<0.000000e+00> : vector<8x16xf32>
    %7 = tpu.matmul %6, %4, %cst_8 {dimension_numbers = #tpu.dot_dimension_numbers<[1], [0], [0], [1], [0, 0, 1, 1], [], []>} : vector<8x4xf32>, vector<4x16xf32>, vector<8x16xf32> -> vector<8x16xf32>
    %8 = vector.broadcast %5 : vector<1x16xf32> to vector<8x16xf32>
    %9 = arith.addf %7, %8 : vector<8x16xf32>
    %cst_9 = arith.constant 0.000000e+00 : f32
    %10 = vector.broadcast %cst_9 : f32 to vector<8x16xf32>
    %11 = arith.maximumf %9, %10 : vector<8x16xf32>
    %c16 = arith.constant 16 : index
    %c0_10 = arith.constant 0 : index
    %12 = vector.load %arg3[%c16, %c0_10] : memref<176x16xf32, #tpu.memory_space<vmem>>, vector<16x16xf32>
    %c32 = arith.constant 32 : index
    %c0_11 = arith.constant 0 : index
    %13 = vector.load %arg3[%c32, %c0_11] : memref<176x16xf32, #tpu.memory_space<vmem>>, vector<1x16xf32>
    %cst_12 = arith.constant dense<0.000000e+00> : vector<8x16xf32>
    %14 = tpu.matmul %11, %12, %cst_12 {dimension_numbers = #tpu.dot_dimension_numbers<[1], [0], [0], [1], [0, 0, 1, 1], [], []>} : vector<8x16xf32>, vector<16x16xf32>, vector<8x16xf32> -> vector<8x16xf32>
    %cst_13 = arith.constant dense<0.000000e+00> : vector<8x16xf32>
    %15 = tpu.matmul %1, %14, %cst_13 {dimension_numbers = #tpu.dot_dimension_numbers<[1], [0], [0], [1], [0, 0, 1, 1], [], []>} : vector<8x8xf32>, vector<8x16xf32>, vector<8x16xf32> -> vector<8x16xf32>
    %16 = vector.broadcast %13 : vector<1x16xf32> to vector<8x16xf32>
    %17 = arith.addf %15, %16 : vector<8x16xf32>
    %cst_14 = arith.constant 0.000000e+00 : f32
    %18 = vector.broadcast %cst_14 : f32 to vector<8x16xf32>
    %19 = arith.maximumf %17, %18 : vector<8x16xf32>
    %c40 = arith.constant 40 : index
    %c0_15 = arith.constant 0 : index
    %20 = vector.load %arg3[%c40, %c0_15] : memref<176x16xf32, #tpu.memory_space<vmem>>, vector<16x16xf32>
    %c56 = arith.constant 56 : index
    %c0_16 = arith.constant 0 : index
    %21 = vector.load %arg3[%c56, %c0_16] : memref<176x16xf32, #tpu.memory_space<vmem>>, vector<1x16xf32>
    %cst_17 = arith.constant dense<0.000000e+00> : vector<8x16xf32>
    %22 = tpu.matmul %19, %20, %cst_17 {dimension_numbers = #tpu.dot_dimension_numbers<[1], [0], [0], [1], [0, 0, 1, 1], [], []>} : vector<8x16xf32>, vector<16x16xf32>, vector<8x16xf32> -> vector<8x16xf32>
    %cst_18 = arith.constant dense<0.000000e+00> : vector<8x16xf32>
    %23 = tpu.matmul %1, %22, %cst_18 {dimension_numbers = #tpu.dot_dimension_numbers<[1], [0], [0], [1], [0, 0, 1, 1], [], []>} : vector<8x8xf32>, vector<8x16xf32>, vector<8x16xf32> -> vector<8x16xf32>
    %24 = vector.broadcast %21 : vector<1x16xf32> to vector<8x16xf32>
    %25 = arith.addf %23, %24 : vector<8x16xf32>
    %cst_19 = arith.constant 0.000000e+00 : f32
    %26 = vector.broadcast %cst_19 : f32 to vector<8x16xf32>
    %27 = arith.maximumf %25, %26 : vector<8x16xf32>
    %c64 = arith.constant 64 : index
    %c0_20 = arith.constant 0 : index
    %28 = vector.load %arg3[%c64, %c0_20] : memref<176x16xf32, #tpu.memory_space<vmem>>, vector<16x16xf32>
    %c80 = arith.constant 80 : index
    %c0_21 = arith.constant 0 : index
    %29 = vector.load %arg3[%c80, %c0_21] : memref<176x16xf32, #tpu.memory_space<vmem>>, vector<1x16xf32>
    %cst_22 = arith.constant dense<0.000000e+00> : vector<8x16xf32>
    %30 = tpu.matmul %27, %28, %cst_22 {dimension_numbers = #tpu.dot_dimension_numbers<[1], [0], [0], [1], [0, 0, 1, 1], [], []>} : vector<8x16xf32>, vector<16x16xf32>, vector<8x16xf32> -> vector<8x16xf32>
    %cst_23 = arith.constant dense<0.000000e+00> : vector<8x16xf32>
    %31 = tpu.matmul %1, %30, %cst_23 {dimension_numbers = #tpu.dot_dimension_numbers<[1], [0], [0], [1], [0, 0, 1, 1], [], []>} : vector<8x8xf32>, vector<8x16xf32>, vector<8x16xf32> -> vector<8x16xf32>
    %32 = vector.broadcast %29 : vector<1x16xf32> to vector<8x16xf32>
    %33 = arith.addf %31, %32 : vector<8x16xf32>
    %cst_24 = arith.constant 0.000000e+00 : f32
    %34 = vector.broadcast %cst_24 : f32 to vector<8x16xf32>
    %35 = arith.maximumf %33, %34 : vector<8x16xf32>
    %c88 = arith.constant 88 : index
    %c0_25 = arith.constant 0 : index
    %36 = vector.load %arg3[%c88, %c0_25] : memref<176x16xf32, #tpu.memory_space<vmem>>, vector<16x16xf32>
    %c104 = arith.constant 104 : index
    %c0_26 = arith.constant 0 : index
    %37 = vector.load %arg3[%c104, %c0_26] : memref<176x16xf32, #tpu.memory_space<vmem>>, vector<1x16xf32>
    %cst_27 = arith.constant dense<0.000000e+00> : vector<8x16xf32>
    %38 = tpu.matmul %35, %36, %cst_27 {dimension_numbers = #tpu.dot_dimension_numbers<[1], [0], [0], [1], [0, 0, 1, 1], [], []>} : vector<8x16xf32>, vector<16x16xf32>, vector<8x16xf32> -> vector<8x16xf32>
    %cst_28 = arith.constant dense<0.000000e+00> : vector<8x16xf32>
    %39 = tpu.matmul %1, %38, %cst_28 {dimension_numbers = #tpu.dot_dimension_numbers<[1], [0], [0], [1], [0, 0, 1, 1], [], []>} : vector<8x8xf32>, vector<8x16xf32>, vector<8x16xf32> -> vector<8x16xf32>
    %40 = vector.broadcast %37 : vector<1x16xf32> to vector<8x16xf32>
    %41 = arith.addf %39, %40 : vector<8x16xf32>
    %cst_29 = arith.constant 0.000000e+00 : f32
    %42 = vector.broadcast %cst_29 : f32 to vector<8x16xf32>
    %43 = arith.maximumf %41, %42 : vector<8x16xf32>
    %c112 = arith.constant 112 : index
    %c0_30 = arith.constant 0 : index
    %44 = vector.load %arg3[%c112, %c0_30] : memref<176x16xf32, #tpu.memory_space<vmem>>, vector<16x8xf32>
    %c128 = arith.constant 128 : index
    %c0_31 = arith.constant 0 : index
    %45 = vector.load %arg3[%c128, %c0_31] : memref<176x16xf32, #tpu.memory_space<vmem>>, vector<1x8xf32>
    %cst_32 = arith.constant dense<0.000000e+00> : vector<8x8xf32>
    %46 = tpu.matmul %43, %44, %cst_32 {dimension_numbers = #tpu.dot_dimension_numbers<[1], [0], [0], [1], [0, 0, 1, 1], [], []>} : vector<8x16xf32>, vector<16x8xf32>, vector<8x8xf32> -> vector<8x8xf32>
    %cst_33 = arith.constant dense<0.000000e+00> : vector<8x8xf32>
    %47 = tpu.matmul %1, %46, %cst_33 {dimension_numbers = #tpu.dot_dimension_numbers<[1], [0], [0], [1], [0, 0, 1, 1], [], []>} : vector<8x8xf32>, vector<8x8xf32>, vector<8x8xf32> -> vector<8x8xf32>
    %48 = vector.broadcast %45 : vector<1x8xf32> to vector<8x8xf32>
    %49 = arith.addf %47, %48 : vector<8x8xf32>
    %cst_34 = arith.constant dense<0xFF800000> : vector<8xf32>
    %50 = vector.multi_reduction <maximumf>, %49, %cst_34 [0] : vector<8x8xf32> to vector<8xf32>
    %51 = vector.shape_cast %50 : vector<8xf32> to vector<1x8xf32>
    %cst_35 = arith.constant dense<0.000000e+00> : vector<8xf32>
    %52 = vector.multi_reduction <add>, %49, %cst_35 [0] : vector<8x8xf32> to vector<8xf32>
    %53 = vector.shape_cast %52 : vector<8xf32> to vector<1x8xf32>
    %cst_36 = arith.constant 1.250000e-01 : f32
    %54 = vector.broadcast %cst_36 : f32 to vector<1x8xf32>
    %55 = arith.mulf %53, %54 : vector<1x8xf32>
    %c136 = arith.constant 136 : index
    %c0_37 = arith.constant 0 : index
    %56 = vector.load %arg3[%c136, %c0_37] : memref<176x16xf32, #tpu.memory_space<vmem>>, vector<8x4xf32>
    %cst_38 = arith.constant dense<0.000000e+00> : vector<1x4xf32>
    %57 = tpu.matmul %51, %56, %cst_38 {dimension_numbers = #tpu.dot_dimension_numbers<[1], [0], [0], [1], [0, 0, 1, 1], [], []>} : vector<1x8xf32>, vector<8x4xf32>, vector<1x4xf32> -> vector<1x4xf32>
    %c144 = arith.constant 144 : index
    %c0_39 = arith.constant 0 : index
    %58 = vector.load %arg3[%c144, %c0_39] : memref<176x16xf32, #tpu.memory_space<vmem>>, vector<8x4xf32>
    %cst_40 = arith.constant dense<0.000000e+00> : vector<1x4xf32>
    %59 = tpu.matmul %55, %58, %cst_40 {dimension_numbers = #tpu.dot_dimension_numbers<[1], [0], [0], [1], [0, 0, 1, 1], [], []>} : vector<1x8xf32>, vector<8x4xf32>, vector<1x4xf32> -> vector<1x4xf32>
    %60 = arith.addf %57, %59 : vector<1x4xf32>
    %c152 = arith.constant 152 : index
    %c0_41 = arith.constant 0 : index
    %61 = vector.load %arg3[%c152, %c0_41] : memref<176x16xf32, #tpu.memory_space<vmem>>, vector<1x4xf32>
    %62 = arith.addf %60, %61 : vector<1x4xf32>
    %c160 = arith.constant 160 : index
    %c0_42 = arith.constant 0 : index
    %63 = vector.load %arg3[%c160, %c0_42] : memref<176x16xf32, #tpu.memory_space<vmem>>, vector<4x8xf32>
    %cst_43 = arith.constant dense<0.000000e+00> : vector<1x8xf32>
    %64 = tpu.matmul %62, %63, %cst_43 {dimension_numbers = #tpu.dot_dimension_numbers<[1], [0], [0], [1], [0, 0, 1, 1], [], []>} : vector<1x4xf32>, vector<4x8xf32>, vector<1x8xf32> -> vector<1x8xf32>
    %c168 = arith.constant 168 : index
    %c0_44 = arith.constant 0 : index
    %65 = vector.load %arg3[%c168, %c0_44] : memref<176x16xf32, #tpu.memory_space<vmem>>, vector<1x8xf32>
    %66 = arith.addf %64, %65 : vector<1x8xf32>
    %c0_45 = arith.constant 0 : index
    %c0_46 = arith.constant 0 : index
    %c0_47 = arith.constant 0 : index
    %67 = vector.load %arg4[%c0_45, %c0_46, %c0_47] : memref<1x1x8xf32, #tpu.memory_space<vmem>>, vector<1x1x8xf32>
    %68 = vector.shape_cast %67 : vector<1x1x8xf32> to vector<1x8xf32>
    %69 = vector.shape_cast %66 : vector<1x8xf32> to vector<1x1x8xf32>
    tpu.vector_store %arg4[%c0_45, %c0_46, %c0_47], %69 {strides = array<i32>} : memref<1x1x8xf32, #tpu.memory_space<vmem>>, vector<1x1x8xf32>,
    return
  }
  func.func @transform_0(%arg0: i32) -> (i32, i32, i32) {
    %c0_i32 = arith.constant 0 : i32
    %c0_i32_0 = arith.constant 0 : i32
    %c0_i32_1 = arith.constant 0 : i32
    return %arg0, %c0_i32, %c0_i32_0 : i32, i32, i32
  }
  func.func @transform_1(%arg0: i32) -> (i32, i32, i32) {
    %c0_i32 = arith.constant 0 : i32
    %c0_i32_0 = arith.constant 0 : i32
    %c0_i32_1 = arith.constant 0 : i32
    return %arg0, %c0_i32, %c0_i32_0 : i32, i32, i32
  }
  func.func @transform_2(%arg0: i32) -> (i32, i32) {
    %c0_i32 = arith.constant 0 : i32
    %c0_i32_0 = arith.constant 0 : i32
    %c0_i32_1 = arith.constant 0 : i32
    return %c0_i32, %c0_i32_0 : i32, i32
  }
  func.func @transform_3(%arg0: i32) -> (i32, i32, i32) {
    %c0_i32 = arith.constant 0 : i32
    %c0_i32_0 = arith.constant 0 : i32
    %c0_i32_1 = arith.constant 0 : i32
    return %arg0, %c0_i32, %c0_i32_0 : i32, i32, i32
  }
}

</mosaic_0001>

<bundles_post_ra>
// kernel: _lambda_.1
= control target key start
LH: loop header
LB: loop body
LE: loop exit
PB: predicated region body
PF: predicated region fallthrough
CT: control target
= control target key end

     0   :  { %8 = vsyncpa [#allocation3], 0  ;;  %s1956_s0 = inlined_call_operand.vmem [shape: f32[2,8,8], index: 0, kind: input, shape index: {}]   ;;  %s1957_s1 = inlined_call_operand.vmem [shape: f32[2,8,4], index: 1, kind: input, shape index: {}]   ;;  %s1958_s2 = inlined_call_operand.vmem [shape: f32[176,16], index: 2, kind: input, shape index: {}]   ;;  %s1959_s3 = inlined_call_operand.hbm [shape: f32[2,1,8], index: 3, kind: output, shape index: {}]  }
   0x1   :  { %10 = vsyncpa [#allocation3 + $0x1], 0  ;;  %s1720_s12 = smov 0   ;;  %s1722_s13 = smov 0  }
   0x2   :  { %s1724_s14 = smov 0   ;;  %s1726_s15 = smov 0  }
   0x3 LB: > { %s1741_s16 = sadd.s32 4294967295, %s1694_s15   ;;  %s1423_s17 = sadd.s32 4294967294, %s1694_s15   ;;  %s1694_s15 = sphi %s1726_s15, %s1965_s15   ;;  %s1690_s14 = sphi %s1724_s14, %s1964_s14   ;;  %s1686_s13 = sphi %s1722_s13, %s1963_s13   ;;  %s1682_s12 = sphi %s1720_s12, %s1962_s12  }
   0x4   : > { %s1745_s18 = sadd.s32 1, %s1694_s15   ;;  %s96_s19 = sadd.s32 1, %s1690_s14 }
   0x5   : > { %s93_s20 = ssub.s32 %s1694_s15, %s1745_s18  ;;  %p106_p0 = scmp.ne.s32.totalorder %s1690_s14, %s1686_s13 }
   0x6   : > { %p94_p1 = scmp.eq.s32.totalorder %s93_s20, 0  ;;  %p107_p2 = scmp.eq.s32.totalorder %s1741_s16, 1 }
   0x7   : > { %p112_p3 = scmp.ne.s32.totalorder %s1686_s13, %s1682_s12  ;;  %p113_p4 = scmp.eq.s32.totalorder %s1423_s17, 1 }
   0x8   : > { %s1756_s21 = scalar_select %p94_p1, %s1690_s14, %s96_s19  }
   0x9   : > { %p1758_p5 = por %p107_p2, %p106_p0  ;;  %p1762_p6 = por %p113_p4, %p112_p3 }
   0xa   : > { %p1426_p7 = scmp.ge.s32.totalorder %s1694_s15, 1  ;;  %p148_p8 = scmp.lt.s32.totalorder %s1694_s15, 3 }
   0xc   : > { %p149_p9 = pnand %p1426_p7, %p148_p8 }
   0xd   : > { %p174_p10 = scmp.lt.s32.totalorder (!%p149_p9), %s1741_s16, 1  ;;  %v1696_v0 = vmov (!%p149_p9), 0.0   ;;  %vm1697_vm0 = vmmov (!%p149_p9), 0   ;;  %vm186_vm1 = vcmask (!%p149_p9), 64512   ;;  %v184_v3 = vld [vmem:[%s1958_s2] sm:$0xf] (!%p149_p9) }
   0xe   : > { %152 = sbr.rel (%p149_p9) target bundleno = 3058 (0xbf2), region = 32  ;;  %1490 = vmatprep.subr.mxu0 (!%p149_p9), %v1696_v0  ;;  %1492 = vmatprep.mubr.msk.f32.mxu0 (!%p149_p9), %vm1697_vm0, %v1696_v0  ;;  %vm268_vm2 = vcmask (!%p149_p9), 1043456   ;;  %vm264_vm3 = vcmask (!%p149_p9), 31744   ;;  %v343_v6 = vld [vmem:[%s1958_s2 + $0x10] sm:$0xff] (!%p149_p9)  ;;  %v344_v7 = vld [vmem:[%s1958_s2 + $0x18] sm:$0xff] (!%p149_p9)  ;;  %v1698_v9 = vmov (!%p149_p9), 0.0|0.0  }
   0xf   : > { %1495 = vmatprep.subr.mxu1 (!%p149_p9), %v1696_v0  ;;  %1497 = vmatprep.mubr.msk.f32.mxu1 (!%p149_p9), %vm1697_vm0, %v1696_v0  ;;  %v1576_v8 = vpack.c.bf16 (!%p149_p9), %v344_v7, %v343_v6  ;;  %v1430_v10 = vld [vmem:[%s1958_s2 + $0x8] ss:$0 sm:$0xff] (!%p149_p9)  ;;  %vm346_vm4 = vcmask (!%p149_p9), 130048   ;;  %v496_v18 = vld [vmem:[%s1958_s2 + $0x30] sm:$0xff] (!%p149_p9)  ;;  %v1434_v20 = vld [vmem:[%s1958_s2 + $0x20] ss:$0 sm:$0xff] (!%p149_p9) }
  0x10   : > { %1496 = vmatpush3.msk.msra.mxu1 (!%p149_p9), %vm268_vm2, %v184_v3  ;;  %v495_v17 = vld [vmem:[%s1958_s2 + $0x28] sm:$0xff] (!%p149_p9)  ;;  %v646_v27 = vld [vmem:[%s1958_s2 + $0x40] sm:$0xff] (!%p149_p9)  ;;  %v1437_v30 = vld [vmem:[%s1958_s2 + $0x38] ss:$0 sm:$0xff] (!%p149_p9)  ;;  %s172_s11 = sand.u32 (!%p149_p9), 1, %s1686_s13   ;;  %s1452_s20 = sshll.u32 (!%p149_p9), %s1741_s16, 4 }
  0x11   : > { %1507 = vmatprep.subr.mxu1 (!%p149_p9), %v1696_v0  ;;  %v1579_v19 = vpack.c.bf16 (!%p149_p9), %v496_v18, %v495_v17  ;;  %v647_v28 = vld [vmem:[%s1958_s2 + $0x48] sm:$0xff] (!%p149_p9)  ;;  %v797_v37 = vld [vmem:[%s1958_s2 + $0x58] sm:$0xff] (!%p149_p9)  ;;  %v798_v38 = vld [vmem:[%s1958_s2 + $0x60] sm:$0xff] (!%p149_p9)  ;;  %vm1341_vm5 = vcmask (!%p149_p9), 57344   ;;  %s1344_s29 = scalar_lea.sflag (!%p149_p9), [#allocation3], %s172_s11 }
  0x12   : > { %v1582_v29 = vpack.c.bf16 (!%p149_p9), %v647_v28, %v646_v27  ;;  %v1585_v39 = vpack.c.bf16 (!%p149_p9), %v798_v38, %v797_v37  ;;  %v1440_v40 = vld [vmem:[%s1958_s2 + $0x50] ss:$0 sm:$0xff] (!%p149_p9)  ;;  %v949_v48 = vld [vmem:[%s1958_s2 + $0x78] sm:$0xff] (!%p149_p9)  ;;  %v1443_v50 = vld [vmem:[%s1958_s2 + $0x68] ss:$0 sm:$0xff] (!%p149_p9) }
  0x13   : > { %v948_v47 = vld [vmem:[%s1958_s2 + $0x70] sm:$0xff] (!%p149_p9)  ;;  %v1113_v57 = vld [vmem:[%s1958_s2 + $0x88] sm:$0xff] (!%p149_p9)  ;;  %v1446_v59 = vld [vmem:[%s1958_s2 + $0x80] ss:$0 sm:$0xff] (!%p149_p9) }
  0x14   : > { %v1588_v49 = vpack.c.bf16 (!%p149_p9), %v949_v48, %v948_v47  ;;  %v1114_v58 = vld [vmem:[%s1958_s2 + $0x90] sm:$0xff] (!%p149_p9) }
  0x15   : > { %s175_s24 = scalar_select %p174_p10, %s1741_s16, 1 }
  0x16   : > { %s1699_s16 = smov [#allocation2]  }
  0x17   : > { %s1427_s25 = sshll.u32 %s175_s24, 3  ;;  %s173_s24 = scalar_lea.vmem [#allocation2], %s172_s11 }
  0x18   : > { %s177_s28 = scalar_lea.vmem %s1956_s0, %s1427_s25  ;;  %s181_s4 = scalar_lea.vmem %s1957_s1, %s1427_s25 }
  0x19   : > { %v1782_v1 = vld [vmem:[%s177_s28] sm:$0xff]  ;;  %s1356_s25 = sshll.u32 %s173_s24, 4  ;;  %s1914_s28 = scalar_lea.hbm %s1959_s3, %s1452_s20  ;;  %s1916_s25 = int_to_ptr.vmem [resolvable:$true] %s1356_s25 }
  0x1a   : > { %v183_v2 = vld [vmem:[%s181_s4] sm:$0xff]  ;;  %s1632_s30 = scalar_lea.vmem %s1916_s25, 16  ;;  %s1636_s4 = sshll.u32 %s1699_s16, 4  ;;  %s1637_s4 = int_to_ptr.vmem [resolvable:$false] %s1636_s4 }
  0x1b   : > { %1491 = vmatpush3.msra.mxu0 %v183_v2  ;;  %p1633_p11 = scmp.ne.s32.totalorder %s1916_s25, %s1632_s30  ;;  %s1638_s5 = scalar_lea.vmem %s1637_s4, 32 }
  0x1c   : > { %1493 = vmatmul.mubr.msk.f32.vlgmr.msra.gmra.mrb[0].mxu0 %vm186_vm1, %v1782_v1  ;;  %1575 = vmatprep.subr.bf16.mxu0 %v1698_v9  ;;  %p1639_p0 = scmp.lt.s32.totalorder %s1916_s25, %s1637_s4  ;;  %p1640_p1 = scmp.lt.s32.totalorder %s1638_s5, %s1632_s30 }
  0x1d   : > { %1504 = vmatprep.mubr.msk.f32.mxu0 %vm1697_vm0, %v1696_v0  ;;  %1577 = vmatpush3.bf16.msra.mxu0 %v1576_v8  ;;  %p1634_p12 = pnand %p1633_p11, %p1758_p5 }
  0x1e   : > { %1578 = vmatprep.subr.bf16.mxu0 %v1698_v9  ;;  %p1641_p2 = por %p1640_p1, %p1639_p0 }
  0x1f   : > { %p1635_p13 = pneg %p1634_p12 }
  0x21   : > { %p1642_p3 = pnand %p1641_p2, %p1635_p13 }
  0xef   : > { %v256_v4 = vpop.f32.mrb[0].mxu0 }
  0xf0   : > { %v1494_v5 = vpop.f32.mrb[1].mxu0  ;;  %1498 = vmatmul.mubr.msk.f32.vlgmr.msra.gmra.mrb[0].mxu1 %vm264_vm3, %v256_v4 }
  0xf1   : > { %1509 = vmatprep.mubr.msk.f32.mxu1 %vm1697_vm0, %v1696_v0 }
 0x1c3   : > { %v338_v11 = vpop.f32.mrb[0].mxu1 }
 0x1c4   : > { %v339_v12 = vadd.f32 %v1430_v10, %v338_v11  ;;  %v1499_v13 = vpop.f32.mrb[1].mxu1 }
 0x1c6   : > { %v342_v14 = vmax.f32 %v339_v12, 0.0 }
 0x1c8   : > { %1505 = vmatmul.mubr.msk.f32.vlgmr.msra.gmra.mrb[2].mxu0 %vm346_vm4, %v342_v14 }
 0x1c9   : > { %1516 = vmatprep.mubr.msk.f32.mxu0 %vm1697_vm0, %v1696_v0  ;;  %1580 = vmatpush3.bf16.msra.mxu0 %v1579_v19  ;;  %v1261_v19 = vld [vmem:[%s1958_s2 + $0x98] sm:$0x1] }
 0x1ca   : > { %1581 = vmatprep.subr.bf16.mxu0 %v1698_v9 }
 0x29b   : > { %v416_v15 = vpop.f32.mrb[2].mxu0 }
 0x29c   : > { %v1506_v16 = vpop.f32.mrb[3].mxu0  ;;  %1508 = vmatpush3.msra.mxu1 %v416_v15  ;;  %v1263_v15 = vld [vmem:[%s1958_s2 + $0xa0] sm:$0xf] }
 0x29d   : > { %1510 = vmatmul.mubr.msk.f32.vlgmr.msra.gmra.mrb[2].mxu1 %vm186_vm1, %v1782_v1  ;;  %1519 = vmatprep.subr.mxu1 %v1696_v0 }
 0x29e   : > { %1521 = vmatprep.mubr.msk.f32.mxu1 %vm1697_vm0, %v1696_v0 }
 0x370   : > { %v490_v21 = vpop.f32.mrb[2].mxu1 }
 0x371   : > { %v491_v22 = vadd.f32 %v1434_v20, %v490_v21  ;;  %v1511_v23 = vpop.f32.mrb[3].mxu1 }
 0x373   : > { %v494_v24 = vmax.f32 %v491_v22, 0.0 }
 0x375   : > { %1517 = vmatmul.mubr.msk.f32.vlgmr.msra.gmra.mrb[4].mxu0 %vm346_vm4, %v494_v24 }
 0x376   : > { %1528 = vmatprep.mubr.msk.f32.mxu0 %vm1697_vm0, %v1696_v0  ;;  %1583 = vmatpush3.bf16.msra.mxu0 %v1582_v29 }
 0x377   : > { %1584 = vmatprep.subr.bf16.mxu0 %v1698_v9 }
 0x448   : > { %v567_v25 = vpop.f32.mrb[4].mxu0 }
 0x449   : > { %v1518_v26 = vpop.f32.mrb[5].mxu0  ;;  %1520 = vmatpush3.msra.mxu1 %v567_v25 }
 0x44a   : > { %1522 = vmatmul.mubr.msk.f32.vlgmr.msra.gmra.mrb[4].mxu1 %vm186_vm1, %v1782_v1  ;;  %1531 = vmatprep.subr.mxu1 %v1696_v0 }
 0x44b   : > { %1533 = vmatprep.mubr.msk.f32.mxu1 %vm1697_vm0, %v1696_v0 }
 0x51d   : > { %v641_v31 = vpop.f32.mrb[4].mxu1 }
 0x51e   : > { %v642_v32 = vadd.f32 %v1437_v30, %v641_v31  ;;  %v1523_v33 = vpop.f32.mrb[5].mxu1 }
 0x520   : > { %v645_v34 = vmax.f32 %v642_v32, 0.0 }
 0x522   : > { %1529 = vmatmul.mubr.msk.f32.vlgmr.msra.gmra.mrb[6].mxu0 %vm346_vm4, %v645_v34 }
 0x523   : > { %1540 = vmatprep.mubr.msk.f32.mxu0 %vm1697_vm0, %v1696_v0  ;;  %1586 = vmatpush3.bf16.msra.mxu0 %v1585_v39 }
 0x524   : > { %1587 = vmatprep.subr.bf16.mxu0 %v1698_v9 }
 0x5f5   : > { %v718_v35 = vpop.f32.mrb[6].mxu0 }
 0x5f6   : > { %v1530_v36 = vpop.f32.mrb[7].mxu0  ;;  %1532 = vmatpush3.msra.mxu1 %v718_v35 }
 0x5f7   : > { %1534 = vmatmul.mubr.msk.f32.vlgmr.msra.gmra.mrb[6].mxu1 %vm186_vm1, %v1782_v1  ;;  %1543 = vmatprep.subr.mxu1 %v1696_v0 }
 0x5f8   : > { %1545 = vmatprep.mubr.msk.f32.mxu1 %vm1697_vm0, %v1696_v0 }
 0x6ca   : > { %v792_v41 = vpop.f32.mrb[6].mxu1 }
 0x6cb   : > { %v793_v42 = vadd.f32 %v1440_v40, %v792_v41  ;;  %v1535_v43 = vpop.f32.mrb[7].mxu1 }
 0x6cd   : > { %v796_v44 = vmax.f32 %v793_v42, 0.0 }
 0x6cf   : > { %1541 = vmatmul.mubr.msk.f32.vlgmr.msra.gmra.mrb[8].mxu0 %vm346_vm4, %v796_v44 }
 0x6d0   : > { %1552 = vmatprep.mubr.msk.f32.mxu0 %vm1697_vm0, %v1696_v0  ;;  %1589 = vmatpush3.bf16.msra.mxu0 %v1588_v49 }
 0x6d1   : > { %1560 = vmatprep.subr.mxu0 %v1696_v0 }
 0x7a2   : > { %v869_v45 = vpop.f32.mrb[8].mxu0 }
 0x7a3   : > { %v1542_v46 = vpop.f32.mrb[9].mxu0  ;;  %1544 = vmatpush3.msra.mxu1 %v869_v45 }
 0x7a4   : > { %1546 = vmatmul.mubr.msk.f32.vlgmr.msra.gmra.mrb[8].mxu1 %vm186_vm1, %v1782_v1  ;;  %1555 = vmatprep.subr.mxu1 %v1696_v0 }
 0x7a5   : > { %1557 = vmatprep.mubr.msk.f32.mxu1 %vm1697_vm0, %v1696_v0 }
 0x877   : > { %v943_v51 = vpop.f32.mrb[8].mxu1 }
 0x878   : > { %v944_v52 = vadd.f32 %v1443_v50, %v943_v51  ;;  %v1547_v53 = vpop.f32.mrb[9].mxu1 }
 0x87a   : > { %v947_v54 = vmax.f32 %v944_v52, 0.0 }
 0x87c   : > { %1553 = vmatmul.mubr.msk.f32.vlgmr.msra.gmra.mrb[10].mxu0 %vm346_vm4, %v947_v54 }
 0x87d   : > { %1562 = vmatprep.mubr.msk.f32.mxu0 %vm1697_vm0, %v1696_v0  ;;  %1561 = vmatpush3.msra.mxu0 %v1114_v58 }
 0x87e   : > { %1570 = vmatprep.subr.mxu0 %v1696_v0 }
 0x94f   : > { %v1020_v55 = vpop.f32.mrb[10].mxu0 }
 0x950   : > { %v1554_v56 = vpop.f32.mrb[11].mxu0  ;;  %1556 = vmatpush3.msra.mxu1 %v1020_v55 }
 0x951   : > { %1558 = vmatmul.mubr.msk.f32.vlgmr.msra.gmra.mrb[10].mxu1 %vm186_vm1, %v1782_v1  ;;  %1565 = vmatprep.subr.mxu1 %v1696_v0 }
 0x952   : > { %1567 = vmatprep.mubr.msk.f32.mxu1 %vm1697_vm0, %v1696_v0  ;;  %1566 = vmatpush3.msra.mxu1 %v1113_v57 }
 0xa24   : > { %v1094_v60 = vpop.f32.mrb[10].mxu1 }
 0xa25   : > { %v1095_v61 = vadd.f32 %v1446_v59, %v1094_v60  ;;  %v1559_v62 = vpop.f32.mrb[11].mxu1 }
 0xa27   : > { %v1098_v63 = vsel %vm186_vm1, %v1095_v61, -inf  ;;  %v1105_v1 = vsel %vm186_vm1, %v1095_v61, 0.0 }
 0xa28   : > { %v1099_v2 = vrot.slane %v1098_v63, 4  ;;  %v1106_v3 = vrot.slane %v1105_v1, 4 }
 0xa2a   : > { %v1100_v4 = vmax.f32 %v1098_v63, %v1099_v2  ;;  %v1107_v5 = vadd.f32 %v1106_v3, %v1105_v1 }
 0xa2c   : > { %v1101_v6 = vrot.slane %v1100_v4, 2  ;;  %v1108_v7 = vrot.slane %v1107_v5, 2 }
 0xa2e   : > { %v1102_v8 = vmax.f32 %v1100_v4, %v1101_v6  ;;  %v1109_v9 = vadd.f32 %v1108_v7, %v1107_v5 }
 0xa30   : > { %v1103_v10 = vrot.slane %v1102_v8, 1  ;;  %v1110_v11 = vrot.slane %v1109_v9, 1 }
 0xa32   : > { %v1104_v12 = vmax.f32 %v1102_v8, %v1103_v10  ;;  %v1111_v13 = vadd.f32 %v1110_v11, %v1109_v9 }
 0xa34   : > { %v1112_v14 = vmul.f32 0.125, %v1111_v13  ;;  %1568 = vmatmul.mubr.msk.f32.vlgmr.msra.gmra.mrb[12].mxu1 %vm186_vm1, %v1104_v12 }
 0xa36   : > { %1563 = vmatmul.mubr.msk.f32.vlgmr.msra.gmra.mrb[12].mxu0 %vm186_vm1, %v1112_v14 }
 0xa37   : > { %1572 = vmatprep.mubr.msk.f32.mxu0 %vm1697_vm0, %v1696_v0  ;;  %1571 = vmatpush3.msk.msra.mxu0 %vm268_vm2, %v1263_v15  ;;  %v1264_v0 = vld [vmem:[%s1958_s2 + $0xa8] sm:$0x1] }
 0xb07   : > { %v1257_v16 = vpop.f32.mrb[12].mxu1 }
 0xb08   : > { %v1569_v17 = vpop.f32.mrb[13].mxu1 }
 0xb09   : > { %v1184_v18 = vpop.f32.mrb[12].mxu0 }
 0xb0a   : > { %v1258_v20 = vadd.f32 %v1257_v16, %v1184_v18  ;;  %v1564_v21 = vpop.f32.mrb[13].mxu0 }
 0xb0c   : > { %v1262_v22 = vadd.f32 %v1261_v19, %v1258_v20 }
 0xb0e   : > { %1573 = vmatmul.mubr.msk.f32.vlgmr.msra.gmra.mrb[14].mxu0 %vm264_vm3, %v1262_v22 }
 0xbe1   : > { %v1337_v23 = vpop.f32.mrb[14].mxu0 }
 0xbe2   : > { %v1338_v24 = vadd.f32 %v1337_v23, %v1264_v0  ;;  %v1574_v25 = vpop.f32.mrb[15].mxu0 }
 0xbe4   : > { %1342 = vst.msk [vmem:[%s173_s24] sm:$0x1] %vm1341_vm5, %v1338_v24 }
 0xbe5   : > { %1645 = shalt.err (!%p1642_p3)
}
 0xbe6   : > { %s1646_s6 = scalar_lea.hbm %s1914_s28, 16  ;;  %s1650_s9 = scalar_lea.hbm %s1959_s3, 32 }
 0xbe7   : > { %p1647_p4 = scmp.ne.s32.totalorder %s1914_s28, %s1646_s6  ;;  %p1651_p9 = scmp.lt.u32.totalorder %s1914_s28, %s1959_s3 }
 0xbe8   : > { %p1652_p10 = scmp.lt.u32.totalorder %s1650_s9, %s1646_s6  ;;  %p1654_p12 = scmp.lt.u32.totalorder %s1646_s6, %s1914_s28 }
 0xbe9   : > { %p1648_p7 = pnand %p1647_p4, %p1758_p5 }
 0xbea   : > { %p1653_p11 = por %p1652_p10, %p1651_p9 }
 0xbeb   : > { %p1649_p8 = pneg %p1648_p7 }
 0xbec   : > { %p1655_p13 = por %p1654_p12, %p1653_p11 }
 0xbee   : > { %p1656_p0 = pnand %p1655_p13, %p1649_p8 }
 0xbf0   : > { %1659 = shalt.err (!%p1656_p0)
}
 0xbf1   : > { %1590 = dma.vmem_to_hbm [thread:$0]  (%p1758_p5), %s1916_s25, 16, %s1914_s28, %s1344_s29  }
 0xbf2 PF: > { %p1596_p1 = scmp.ge.s32.totalorder %s1694_s15, 2  ;;  %s1368_s17 = sand.u32 1, %s1682_s12  }
 0xbf3   : > { %s1369_s19 = scalar_lea.sflag [#allocation3], %s1368_s17 }
 0xbf4   : > { %p1593_p2 = pnand %p1596_p1, %p1762_p6 }
 0xbf6   : > { %1677 = dma.done.wait (!%p1593_p2), %s1369_s19, 16  }
 0xbf7   : > { %1679 = vsyncadd (!%p1593_p2), %s1369_s19, 4294967280  ;;  %p13_p3 = scmp.ge.s32.totalorder %s1745_s18, 4   ;;  %s1962_s12 = smov %s1686_s13 }
 0xbf8   : > { %s1963_s13 = smov %s1690_s14  ;;  %s1964_s14 = smov %s1756_s21 }
 0xbf9   : > { %s1965_s15 = smov %s1745_s18  ;;  %15 = sbr.rel (!%p13_p3) target bundleno = 3 (0x3), region = 70 }
 0xc00   :  { %1373 = vsyncpa [#allocation3], 1 }
 0xc01   :  { %1375 = vsyncpa [#allocation3 + $0x1], 1 }

</bundles_post_ra>
